<compile_context>
chip_gen: v5e
topology: v5e:2x2
jax: 0.10.0
libtpu: 0.0.40
codegen_flags: <defaults>
</compile_context>

<pallas_src>
import jax
import jax.numpy as jnp
from jax.experimental import pallas as pl
from jax.experimental.pallas import tpu as pltpu


def _round_up(v, m):
    return -(-int(v) // int(m)) * int(m)


def make_gennet_kernel(act_dtype):
    """Kernel factory; `act_dtype` is the dtype of hidden activations between
    layers (f32 everywhere-safe; bf16 recommended on v6e/v7x)."""

    def gennet_kernel(x_ref, bi_ref, weff_ref, beff_ref,
                      w1_ref, b1_ref, w2_ref, b2_ref, w3_ref, b3_ref,
                      wo_ref, bo_ref, o_ref):
        d_in, tb = x_ref.shape                          # x is feature-major (D_in, TB)
        xv = x_ref[...]                                 # (d_in, tb) f32

        # ---- bilinear form q[b] = x[:,b]^T B x[:,b] on VPU + XLU:
        # Bx as a full (d_in, tb) tile: lane-broadcast bi column * sublane-broadcast
        # x row; reduction over the (tiny) feature axis goes to the XLU slot.
        bx = jnp.zeros((d_in, tb), jnp.float32)
        for j in range(d_in):                           # d_in is tiny & static
            bx = bx + bi_ref[:, j:j + 1] * xv[j:j + 1, :]
        q = jnp.sum(xv * bx, axis=0, keepdims=True)     # (1, tb)

        # ---- equiv_layer fused with MLP Linear-0 (both affine in scalar q):
        #      h0 = relu(W0 @ (w_eq*q + b_eq) + b0) = relu(w_eff*q + b_eff)
        h = jnp.maximum(weff_ref[...] * q + beff_ref[...], 0.0).astype(act_dtype)

        # ---- hidden layers on the MXU (bf16 operands, f32 accumulation);
        #      batch on lanes keeps everything lane-dense.
        def layer(w_ref, b_ref, h):
            z = jnp.dot(w_ref[...], h.astype(w_ref.dtype),
                        preferred_element_type=jnp.float32)
            z = z.astype(act_dtype) + b_ref[...]
            return jnp.maximum(z, 0)

        h = layer(w1_ref, b1_ref, h)
        h = layer(w2_ref, b2_ref, h)
        h = layer(w3_ref, b3_ref, h)

        # ---- output layer: (d_out, H) @ (H, TB) -> lane-dense (d_out, TB) store
        o_ref[...] = (jnp.dot(wo_ref[...], h.astype(wo_ref.dtype),
                              preferred_element_type=jnp.float32)
                      + bo_ref[...])

    return gennet_kernel


def linear_params(key, fan_in, fan_out):
    """PyTorch nn.Linear-style uniform init, kept in PyTorch (out,in) layout;
    bias returned as an (out, 1) column (feature-major friendly)."""
    kw, kb = jax.random.split(key)
    bound = 1.0 / jnp.sqrt(float(fan_in))
    w = jax.random.uniform(kw, (fan_out, fan_in), jnp.float32, -bound, bound)
    b = jax.random.uniform(kb, (fan_out, 1), jnp.float32, -bound, bound)
    return w, b


def make_gennet_params(key, d_in=4, hidden=32, d_out=1, n_hidden=3):
    keys = jax.random.split(key, n_hidden + 4)
    # bi_tensor: randn(d_in, d_in) symmetrized:  (B + B^T) * 0.5
    bi = jax.random.normal(keys[0], (d_in, d_in), jnp.float32)
    bi = (bi + bi.T) * 0.5
    weq, beq = linear_params(keys[1], 1, d_in)            # equiv_layer: Linear(1, d_in)
    w0, b0 = linear_params(keys[2], d_in, hidden)          # Linear(d_in, hidden)
    hid = [linear_params(keys[3 + i], hidden, hidden) for i in range(n_hidden)]
    wo, bo = linear_params(keys[3 + n_hidden], hidden, d_out)
    return dict(bi=bi, weq=weq, beq=beq, w0=w0, b0=b0, hid=hid, wo=wo, bo=bo)


def gennet_forward(x, p, tb=512, matmul_dtype=jnp.bfloat16, act_dtype=jnp.float32):
    """Pallas forward.

    tb            : batch tile (rows per grid step); rounded to a multiple of 128.
                    The wrapper forces an even grid of >= 2 steps when B > 128 so
                    both v7x TensorCores get work (harmless on v5e/v6e).
    matmul_dtype  : MXU operand dtype for the HxH / output layers (default bf16,
                    f32 accumulation; the MXU is bf16-native on v5e/v6e/v7x).
    act_dtype     : dtype of hidden activations between layers. Keep f32 on v5e
                    (no bf16 VALU); set jnp.bfloat16 on v6e/v7x to halve vreg and
                    load/store pressure of the bias+ReLU chain.
    """
    B, d_in = x.shape
    H = p["w0"].shape[0]
    d_out = p["wo"].shape[0]

    # Fold equiv_layer (Linear(1,d_in)) into MLP Linear-0 -- exact up to fp
    # reassociation (differences vs the unfused reference are ~1e-6 level).
    w_eff = jnp.sum(p["w0"] * p["weq"][:, 0][None, :], axis=1, keepdims=True)        # (H,1)
    b_eff = jnp.sum(p["w0"] * p["beq"][:, 0][None, :], axis=1, keepdims=True) + p["b0"]

    (w1, b1), (w2, b2), (w3, b3) = p["hid"]
    wo, bo = p["wo"], p["bo"]
    w1m, w2m, w3m, wom = (w.astype(matmul_dtype) for w in (w1, w2, w3, wo))
    b1a, b2a, b3a = (b.astype(act_dtype) for b in (b1, b2, b3))                       # bo stays f32

    # --- batch tiling: >= 2 even grid steps when B > 128 (v7x megacore balance),
    #     tb shrunk (not tiles added) so padding stays minimal.
    tb = max(128, _round_up(int(tb), 128))
    n_blk = pl.cdiv(B, tb)
    if B > 128 and n_blk == 1:
        n_blk = 2
    if n_blk > 1 and n_blk % 2:
        n_blk += 1
    tb = max(128, _round_up(pl.cdiv(B, n_blk), 128))
    b_pad = n_blk * tb

    # Feature-major input (D_in, B_pad). TODO(synk): keep upstream activations
    # feature-major (or fuse this transpose into the producer) -- x is the dominant
    # HBM stream and this transpose+pad adds an extra write+read of it.
    x_fm = x.T
    if b_pad != B:
        x_fm = jnp.pad(x_fm, ((0, 0), (0, b_pad - B)))

    def const(shape):
        return pl.BlockSpec(shape, lambda i: (0, 0))      # VMEM-resident across steps

    flops = b_pad * (2 * d_in * d_in + 2 * d_in + 2 * H
                     + 3 * (2 * H * H + 2 * H) + 2 * H * d_out + d_out)
    weight_bytes = sum(int(a.size) * a.dtype.itemsize for a in
                       (p["bi"], w_eff, b_eff, w1m, b1a, w2m, b2a, w3m, b3a, wom, bo))
    bytes_accessed = int(x_fm.size) * 4 + b_pad * d_out * 4 + weight_bytes

    out_t = pl.pallas_call(
        make_gennet_kernel(act_dtype),
        out_shape=jax.ShapeDtypeStruct((d_out, b_pad), jnp.float32),
        grid=(n_blk,),
        in_specs=[
            # x tile is KB-scale; default double-buffering hides its DMA. If it ever
            # shows as exposed at large grids, add pipeline_mode=pl.Buffered(3) here.
            pl.BlockSpec((d_in, tb), lambda i: (0, i)),              # x (feature-major)
            const((d_in, d_in)),                                     # bi_tensor (VMEM columns)
            const((H, 1)), const((H, 1)),                            # fused equiv + Linear-0
            const((H, H)), const((H, 1)),                            # hidden 1
            const((H, H)), const((H, 1)),                            # hidden 2
            const((H, H)), const((H, 1)),                            # hidden 3
            const((d_out, H)), const((d_out, 1)),                    # output layer
        ],
        out_specs=pl.BlockSpec((d_out, tb), lambda i: (0, i)),       # lane-dense output
        compiler_params=pltpu.CompilerParams(
            # "parallel" shards the batch axis across v7x TensorCores; switch to
            # pltpu.CORE_PARALLEL if profiling shows it does not split.
            dimension_semantics=("parallel",)),
        cost_estimate=pl.CostEstimate(
            flops=int(flops), transcendentals=0, bytes_accessed=int(bytes_accessed)),
    )(x_fm, p["bi"], w_eff, b_eff, w1m, b1a, w2m, b2a, w3m, b3a, wom, bo)

    return out_t[:, :B].T                                            # (B, d_out)


def gennet_reference(x, p):
    """Pure-JAX reference mirroring the PyTorch forward (unfused, f32)."""
    with jax.default_matmul_precision("float32"):
        q = jnp.einsum('bi,ij,bj->b', x, p["bi"], x)[:, None]        # (B, 1)
        y = q @ p["weq"].T + p["beq"].T                              # (B, D_in)
        h = jnp.maximum(y @ p["w0"].T + p["b0"].T, 0.0)
        for (w, b) in p["hid"]:
            h = jnp.maximum(h @ w.T + b.T, 0.0)
        return h @ p["wo"].T + p["bo"].T


if __name__ == "__main__":
    key = jax.random.PRNGKey(0)
    kx, kp = jax.random.split(key)

    B, D_IN, HIDDEN, D_OUT = 300, 4, 32, 1
    x = jax.random.normal(kx, (B, D_IN), jnp.float32)
    params = make_gennet_params(kp, d_in=D_IN, hidden=HIDDEN, d_out=D_OUT, n_hidden=3)

    ref = gennet_reference(x, params)

    # f32 MXU path: exactness check (tight tolerance). B=300 -> tb=256, grid=(2,)
    # (exercises the even-grid batch pipeline + padding).
    out_f32 = jax.block_until_ready(
        gennet_forward(x, params, matmul_dtype=jnp.float32, act_dtype=jnp.float32))
    assert out_f32.shape == (B, D_OUT)
    assert jnp.allclose(out_f32, ref, atol=1e-4, rtol=1e-4)

    # Default bf16-MXU path (f32 accumulation): looser, scale-relative tolerance.
    out_bf16 = jax.block_until_ready(gennet_forward(x, params))
    assert out_bf16.shape == (B, D_OUT)
    err = jnp.max(jnp.abs(out_bf16 - ref))
    scale = jnp.max(jnp.abs(ref)) + 1.0
    assert err / scale < 5e-2, (err, scale)

    print("KERNEL_OK")
</pallas_src>

<mosaic_0001>
module attributes {stable_mosaic.version = 11 : i64} {
  func.func @gennet_kernel(%arg0: i32, %arg1: memref<4x256xf32, #tpu.memory_space<vmem>>, %arg2: memref<4x4xf32, #tpu.memory_space<vmem>>, %arg3: memref<32x1xf32, #tpu.memory_space<vmem>>, %arg4: memref<32x1xf32, #tpu.memory_space<vmem>>, %arg5: memref<32x32xf32, #tpu.memory_space<vmem>>, %arg6: memref<32x1xf32, #tpu.memory_space<vmem>>, %arg7: memref<32x32xf32, #tpu.memory_space<vmem>>, %arg8: memref<32x1xf32, #tpu.memory_space<vmem>>, %arg9: memref<32x32xf32, #tpu.memory_space<vmem>>, %arg10: memref<32x1xf32, #tpu.memory_space<vmem>>, %arg11: memref<1x32xf32, #tpu.memory_space<vmem>>, %arg12: memref<1x1xf32, #tpu.memory_space<vmem>>, %arg13: memref<1x256xf32, #tpu.memory_space<vmem>>) attributes {dimension_semantics = [#tpu.dimension_semantics<parallel>], iteration_bounds = array<i64: 2>, scalar_prefetch = 0 : i64, scratch_operands = 0 : i64, tpu.core_type = #tpu.core_type<tc>, window_params = [{transform_indices = @transform_0, window_bounds = array<i64: 4, 256>}, {pipeline_mode = #tpu.pipeline_mode<synchronous>, transform_indices = @transform_1, window_bounds = array<i64: 4, 4>}, {pipeline_mode = #tpu.pipeline_mode<synchronous>, transform_indices = @transform_2, window_bounds = array<i64: 32, 1>}, {pipeline_mode = #tpu.pipeline_mode<synchronous>, transform_indices = @transform_3, window_bounds = array<i64: 32, 1>}, {pipeline_mode = #tpu.pipeline_mode<synchronous>, transform_indices = @transform_4, window_bounds = array<i64: 32, 32>}, {pipeline_mode = #tpu.pipeline_mode<synchronous>, transform_indices = @transform_5, window_bounds = array<i64: 32, 1>}, {pipeline_mode = #tpu.pipeline_mode<synchronous>, transform_indices = @transform_6, window_bounds = array<i64: 32, 32>}, {pipeline_mode = #tpu.pipeline_mode<synchronous>, transform_indices = @transform_7, window_bounds = array<i64: 32, 1>}, {pipeline_mode = #tpu.pipeline_mode<synchronous>, transform_indices = @transform_8, window_bounds = array<i64: 32, 32>}, {pipeline_mode = #tpu.pipeline_mode<synchronous>, transform_indices = @transform_9, window_bounds = array<i64: 32, 1>}, {pipeline_mode = #tpu.pipeline_mode<synchronous>, transform_indices = @transform_10, window_bounds = array<i64: 1, 32>}, {pipeline_mode = #tpu.pipeline_mode<synchronous>, transform_indices = @transform_11, window_bounds = array<i64: 1, 1>}, {transform_indices = @transform_12, window_bounds = array<i64: 1, 256>}]} {
    %c0 = arith.constant 0 : index
    %c0_0 = arith.constant 0 : index
    %0 = vector.load %arg1[%c0, %c0_0] : memref<4x256xf32, #tpu.memory_space<vmem>>, vector<4x256xf32>
    %cst = arith.constant 0.000000e+00 : f32
    %1 = vector.broadcast %cst : f32 to vector<4x256xf32>
    %c0_1 = arith.constant 0 : index
    %c0_2 = arith.constant 0 : index
    %2 = vector.load %arg2[%c0_1, %c0_2] : memref<4x4xf32, #tpu.memory_space<vmem>>, vector<4x1xf32>
    %3 = vector.extract_strided_slice %0 {offsets = [0, 0], sizes = [1, 256], strides = [1, 1]} : vector<4x256xf32> to vector<1x256xf32>
    %4 = vector.broadcast %2 : vector<4x1xf32> to vector<4x256xf32>
    %5 = vector.broadcast %3 : vector<1x256xf32> to vector<4x256xf32>
    %6 = arith.mulf %4, %5 : vector<4x256xf32>
    %7 = arith.addf %1, %6 : vector<4x256xf32>
    %c0_3 = arith.constant 0 : index
    %c1 = arith.constant 1 : index
    %8 = vector.load %arg2[%c0_3, %c1] : memref<4x4xf32, #tpu.memory_space<vmem>>, vector<4x1xf32>
    %9 = vector.extract_strided_slice %0 {offsets = [1, 0], sizes = [1, 256], strides = [1, 1]} : vector<4x256xf32> to vector<1x256xf32>
    %10 = vector.broadcast %8 : vector<4x1xf32> to vector<4x256xf32>
    %11 = vector.broadcast %9 : vector<1x256xf32> to vector<4x256xf32>
    %12 = arith.mulf %10, %11 : vector<4x256xf32>
    %13 = arith.addf %7, %12 : vector<4x256xf32>
    %c0_4 = arith.constant 0 : index
    %c2 = arith.constant 2 : index
    %14 = vector.load %arg2[%c0_4, %c2] : memref<4x4xf32, #tpu.memory_space<vmem>>, vector<4x1xf32>
    %15 = vector.extract_strided_slice %0 {offsets = [2, 0], sizes = [1, 256], strides = [1, 1]} : vector<4x256xf32> to vector<1x256xf32>
    %16 = vector.broadcast %14 : vector<4x1xf32> to vector<4x256xf32>
    %17 = vector.broadcast %15 : vector<1x256xf32> to vector<4x256xf32>
    %18 = arith.mulf %16, %17 : vector<4x256xf32>
    %19 = arith.addf %13, %18 : vector<4x256xf32>
    %c0_5 = arith.constant 0 : index
    %c3 = arith.constant 3 : index
    %20 = vector.load %arg2[%c0_5, %c3] : memref<4x4xf32, #tpu.memory_space<vmem>>, vector<4x1xf32>
    %21 = vector.extract_strided_slice %0 {offsets = [3, 0], sizes = [1, 256], strides = [1, 1]} : vector<4x256xf32> to vector<1x256xf32>
    %22 = vector.broadcast %20 : vector<4x1xf32> to vector<4x256xf32>
    %23 = vector.broadcast %21 : vector<1x256xf32> to vector<4x256xf32>
    %24 = arith.mulf %22, %23 : vector<4x256xf32>
    %25 = arith.addf %19, %24 : vector<4x256xf32>
    %26 = arith.mulf %0, %25 : vector<4x256xf32>
    %cst_6 = arith.constant dense<0.000000e+00> : vector<256xf32>
    %27 = vector.multi_reduction <add>, %26, %cst_6 [0] : vector<4x256xf32> to vector<256xf32>
    %28 = vector.shape_cast %27 : vector<256xf32> to vector<1x256xf32>
    %c0_7 = arith.constant 0 : index
    %c0_8 = arith.constant 0 : index
    %29 = vector.load %arg3[%c0_7, %c0_8] : memref<32x1xf32, #tpu.memory_space<vmem>>, vector<32x1xf32>
    %30 = vector.broadcast %29 : vector<32x1xf32> to vector<32x256xf32>
    %31 = vector.broadcast %28 : vector<1x256xf32> to vector<32x256xf32>
    %32 = arith.mulf %30, %31 : vector<32x256xf32>
    %c0_9 = arith.constant 0 : index
    %c0_10 = arith.constant 0 : index
    %33 = vector.load %arg4[%c0_9, %c0_10] : memref<32x1xf32, #tpu.memory_space<vmem>>, vector<32x1xf32>
    %34 = vector.broadcast %33 : vector<32x1xf32> to vector<32x256xf32>
    %35 = arith.addf %32, %34 : vector<32x256xf32>
    %cst_11 = arith.constant 0.000000e+00 : f32
    %36 = vector.broadcast %cst_11 : f32 to vector<32x256xf32>
    %37 = arith.maximumf %35, %36 : vector<32x256xf32>
    %c0_12 = arith.constant 0 : index
    %c0_13 = arith.constant 0 : index
    %38 = vector.load %arg5[%c0_12, %c0_13] : memref<32x32xf32, #tpu.memory_space<vmem>>, vector<32x32xf32>
    %cst_14 = arith.constant dense<0.000000e+00> : vector<32x256xf32>
    %39 = tpu.matmul %38, %37, %cst_14 {dimension_numbers = #tpu.dot_dimension_numbers<[1], [0], [0], [1], [0, 0, 1, 1], [], []>} : vector<32x32xf32>, vector<32x256xf32>, vector<32x256xf32> -> vector<32x256xf32>
    %c0_15 = arith.constant 0 : index
    %c0_16 = arith.constant 0 : index
    %40 = vector.load %arg6[%c0_15, %c0_16] : memref<32x1xf32, #tpu.memory_space<vmem>>, vector<32x1xf32>
    %41 = vector.broadcast %40 : vector<32x1xf32> to vector<32x256xf32>
    %42 = arith.addf %39, %41 : vector<32x256xf32>
    %cst_17 = arith.constant 0.000000e+00 : f32
    %43 = vector.broadcast %cst_17 : f32 to vector<32x256xf32>
    %44 = arith.maximumf %42, %43 : vector<32x256xf32>
    %c0_18 = arith.constant 0 : index
    %c0_19 = arith.constant 0 : index
    %45 = vector.load %arg7[%c0_18, %c0_19] : memref<32x32xf32, #tpu.memory_space<vmem>>, vector<32x32xf32>
    %cst_20 = arith.constant dense<0.000000e+00> : vector<32x256xf32>
    %46 = tpu.matmul %45, %44, %cst_20 {dimension_numbers = #tpu.dot_dimension_numbers<[1], [0], [0], [1], [0, 0, 1, 1], [], []>} : vector<32x32xf32>, vector<32x256xf32>, vector<32x256xf32> -> vector<32x256xf32>
    %c0_21 = arith.constant 0 : index
    %c0_22 = arith.constant 0 : index
    %47 = vector.load %arg8[%c0_21, %c0_22] : memref<32x1xf32, #tpu.memory_space<vmem>>, vector<32x1xf32>
    %48 = vector.broadcast %47 : vector<32x1xf32> to vector<32x256xf32>
    %49 = arith.addf %46, %48 : vector<32x256xf32>
    %cst_23 = arith.constant 0.000000e+00 : f32
    %50 = vector.broadcast %cst_23 : f32 to vector<32x256xf32>
    %51 = arith.maximumf %49, %50 : vector<32x256xf32>
    %c0_24 = arith.constant 0 : index
    %c0_25 = arith.constant 0 : index
    %52 = vector.load %arg9[%c0_24, %c0_25] : memref<32x32xf32, #tpu.memory_space<vmem>>, vector<32x32xf32>
    %cst_26 = arith.constant dense<0.000000e+00> : vector<32x256xf32>
    %53 = tpu.matmul %52, %51, %cst_26 {dimension_numbers = #tpu.dot_dimension_numbers<[1], [0], [0], [1], [0, 0, 1, 1], [], []>} : vector<32x32xf32>, vector<32x256xf32>, vector<32x256xf32> -> vector<32x256xf32>
    %c0_27 = arith.constant 0 : index
    %c0_28 = arith.constant 0 : index
    %54 = vector.load %arg10[%c0_27, %c0_28] : memref<32x1xf32, #tpu.memory_space<vmem>>, vector<32x1xf32>
    %55 = vector.broadcast %54 : vector<32x1xf32> to vector<32x256xf32>
    %56 = arith.addf %53, %55 : vector<32x256xf32>
    %cst_29 = arith.constant 0.000000e+00 : f32
    %57 = vector.broadcast %cst_29 : f32 to vector<32x256xf32>
    %58 = arith.maximumf %56, %57 : vector<32x256xf32>
    %c0_30 = arith.constant 0 : index
    %c0_31 = arith.constant 0 : index
    %59 = vector.load %arg11[%c0_30, %c0_31] : memref<1x32xf32, #tpu.memory_space<vmem>>, vector<1x32xf32>
    %cst_32 = arith.constant dense<0.000000e+00> : vector<1x256xf32>
    %60 = tpu.matmul %59, %58, %cst_32 {dimension_numbers = #tpu.dot_dimension_numbers<[1], [0], [0], [1], [0, 0, 1, 1], [], []>} : vector<1x32xf32>, vector<32x256xf32>, vector<1x256xf32> -> vector<1x256xf32>
    %c0_33 = arith.constant 0 : index
    %c0_34 = arith.constant 0 : index
    %61 = vector.load %arg12[%c0_33, %c0_34] : memref<1x1xf32, #tpu.memory_space<vmem>>, vector<1x1xf32>
    %62 = vector.broadcast %61 : vector<1x1xf32> to vector<1x256xf32>
    %63 = arith.addf %60, %62 : vector<1x256xf32>
    %c0_35 = arith.constant 0 : index
    %c0_36 = arith.constant 0 : index
    %64 = vector.load %arg13[%c0_35, %c0_36] : memref<1x256xf32, #tpu.memory_space<vmem>>, vector<1x256xf32>
    tpu.vector_store %arg13[%c0_35, %c0_36], %63 {strides = array<i32>} : memref<1x256xf32, #tpu.memory_space<vmem>>, vector<1x256xf32>,
    return
  }
  func.func @transform_0(%arg0: i32) -> (i32, i32) {
    %c0_i32 = arith.constant 0 : i32
    %c0_i32_0 = arith.constant 0 : i32
    return %c0_i32, %arg0 : i32, i32
  }
  func.func @transform_1(%arg0: i32) -> (i32, i32) {
    %c0_i32 = arith.constant 0 : i32
    %c0_i32_0 = arith.constant 0 : i32
    %c0_i32_1 = arith.constant 0 : i32
    return %c0_i32, %c0_i32_0 : i32, i32
  }
  func.func @transform_2(%arg0: i32) -> (i32, i32) {
    %c0_i32 = arith.constant 0 : i32
    %c0_i32_0 = arith.constant 0 : i32
    %c0_i32_1 = arith.constant 0 : i32
    return %c0_i32, %c0_i32_0 : i32, i32
  }
  func.func @transform_3(%arg0: i32) -> (i32, i32) {
    %c0_i32 = arith.constant 0 : i32
    %c0_i32_0 = arith.constant 0 : i32
    %c0_i32_1 = arith.constant 0 : i32
    return %c0_i32, %c0_i32_0 : i32, i32
  }
  func.func @transform_4(%arg0: i32) -> (i32, i32) {
    %c0_i32 = arith.constant 0 : i32
    %c0_i32_0 = arith.constant 0 : i32
    %c0_i32_1 = arith.constant 0 : i32
    return %c0_i32, %c0_i32_0 : i32, i32
  }
  func.func @transform_5(%arg0: i32) -> (i32, i32) {
    %c0_i32 = arith.constant 0 : i32
    %c0_i32_0 = arith.constant 0 : i32
    %c0_i32_1 = arith.constant 0 : i32
    return %c0_i32, %c0_i32_0 : i32, i32
  }
  func.func @transform_6(%arg0: i32) -> (i32, i32) {
    %c0_i32 = arith.constant 0 : i32
    %c0_i32_0 = arith.constant 0 : i32
    %c0_i32_1 = arith.constant 0 : i32
    return %c0_i32, %c0_i32_0 : i32, i32
  }
  func.func @transform_7(%arg0: i32) -> (i32, i32) {
    %c0_i32 = arith.constant 0 : i32
    %c0_i32_0 = arith.constant 0 : i32
    %c0_i32_1 = arith.constant 0 : i32
    return %c0_i32, %c0_i32_0 : i32, i32
  }
  func.func @transform_8(%arg0: i32) -> (i32, i32) {
    %c0_i32 = arith.constant 0 : i32
    %c0_i32_0 = arith.constant 0 : i32
    %c0_i32_1 = arith.constant 0 : i32
    return %c0_i32, %c0_i32_0 : i32, i32
  }
  func.func @transform_9(%arg0: i32) -> (i32, i32) {
    %c0_i32 = arith.constant 0 : i32
    %c0_i32_0 = arith.constant 0 : i32
    %c0_i32_1 = arith.constant 0 : i32
    return %c0_i32, %c0_i32_0 : i32, i32
  }
  func.func @transform_10(%arg0: i32) -> (i32, i32) {
    %c0_i32 = arith.constant 0 : i32
    %c0_i32_0 = arith.constant 0 : i32
    %c0_i32_1 = arith.constant 0 : i32
    return %c0_i32, %c0_i32_0 : i32, i32
  }
  func.func @transform_11(%arg0: i32) -> (i32, i32) {
    %c0_i32 = arith.constant 0 : i32
    %c0_i32_0 = arith.constant 0 : i32
    %c0_i32_1 = arith.constant 0 : i32
    return %c0_i32, %c0_i32_0 : i32, i32
  }
  func.func @transform_12(%arg0: i32) -> (i32, i32) {
    %c0_i32 = arith.constant 0 : i32
    %c0_i32_0 = arith.constant 0 : i32
    return %c0_i32, %arg0 : i32, i32
  }
}

</mosaic_0001>

<bundles_post_ra>
// kernel: tpu_custom_call.1
= control target key start
LH: loop header
LB: loop body
LE: loop exit
PB: predicated region body
PF: predicated region fallthrough
CT: control target
= control target key end

     0   :  { %s1479_s0 = inlined_call_operand.vmem [shape: f32[4,512], index: 0, kind: input, shape index: {}]   ;;  %s1480_s1 = inlined_call_operand.vmem [shape: f32[4,4], index: 1, kind: input, shape index: {}]   ;;  %s1481_s2 = inlined_call_operand.vmem [shape: f32[32,1], index: 2, kind: input, shape index: {}]   ;;  %s1482_s3 = inlined_call_operand.vmem [shape: f32[32,1], index: 3, kind: input, shape index: {}]   ;;  %s1483_s4 = inlined_call_operand.vmem [shape: f32[32,32], index: 4, kind: input, shape index: {}]   ;;  %s1484_s5 = inlined_call_operand.vmem [shape: f32[32,1], index: 5, kind: input, shape index: {}]   ;;  %s1485_s6 = inlined_call_operand.vmem [shape: f32[32,32], index: 6, kind: input, shape index: {}]   ;;  %s1486_s7 = inlined_call_operand.vmem [shape: f32[32,1], index: 7, kind: input, shape index: {}]   ;;  %s1487_s8 = inlined_call_operand.vmem [shape: f32[32,32], index: 8, kind: input, shape index: {}]   ;;  %s1488_s9 = inlined_call_operand.vmem [shape: f32[32,1], index: 9, kind: input, shape index: {}]   ;;  %s1489_s10 = inlined_call_operand.vmem [shape: f32[1,32], index: 10, kind: input, shape index: {}]   ;;  %s1490_s11 = inlined_call_operand.<no memory space> [shape: f32[1,1], index: 11, kind: input, shape index: {}]   ;;  %s1491_s12 = inlined_call_operand.hbm [shape: f32[1,512], index: 12, kind: output, shape index: {}]  }
   0x1   :  { %1492 = sst [smem:[#allocation6_spill]] %s1479_s0  ;;  %v17_v0 = vstv %s1490_s11 }
   0x2   :  { %18 = vst [vmem:[#allocation2] sm:$0x1] %v17_v0 }
   0x3   :  { %19 = vsyncpa [#allocation4], 0 }
   0x4   :  { %21 = vsyncpa [#allocation4 + $0x1], 0  ;;  %s1263_s23 = smov 0   ;;  %s1265_s24 = smov 0  }
   0x5   :  { %s1267_s25 = smov 0   ;;  %s1269_s26 = smov 0  }
   0x6 LB: > { %s1031_s11 = sadd.s32 4294967295, %s1189_s26   ;;  %s1032_s27 = sadd.s32 4294967294, %s1189_s26   ;;  %s1189_s26 = sphi %s1269_s26, %s1499_s26   ;;  %s1185_s25 = sphi %s1267_s25, %s1498_s25   ;;  %s1181_s24 = sphi %s1265_s24, %s1497_s24   ;;  %s1177_s23 = sphi %s1263_s23, %s1496_s23  }
   0x7   : > { %s1286_s28 = sadd.s32 1, %s1189_s26   ;;  %s291_s29 = sadd.s32 1, %s1185_s25 }
   0x8   : > { %s288_s30 = ssub.s32 %s1189_s26, %s1286_s28  ;;  %p301_p0 = scmp.ne.s32.totalorder %s1185_s25, %s1181_s24 }
   0x9   : > { %p289_p1 = scmp.eq.s32.totalorder %s288_s30, 0  ;;  %p302_p2 = scmp.eq.s32.totalorder %s1031_s11, 1 }
   0xa   : > { %p307_p3 = scmp.ne.s32.totalorder %s1181_s24, %s1177_s23  ;;  %p308_p4 = scmp.eq.s32.totalorder %s1032_s27, 1 }
   0xb   : > { %s1298_s13 = scalar_select %p289_p1, %s1185_s25, %s291_s29  }
   0xc   : > { %p1300_p5 = por %p302_p2, %p301_p0  ;;  %p1304_p6 = por %p308_p4, %p307_p3 }
   0xd   : > { %p1035_p7 = scmp.ge.s32.totalorder %s1189_s26, 1  ;;  %p368_p8 = scmp.lt.s32.totalorder %s1189_s26, 3 }
   0xf   : > { %p369_p9 = pnand %p1035_p7, %p368_p8 }
  0x10   : > { %s1375_s18 = sshll.u32 (!%p369_p9), %s1031_s11, 1  ;;  %s1495_s0 = sld [smem:[#allocation6_spill]] (!%p369_p9) }
  0x11   : > { %372 = sbr.rel (%p369_p9) target bundleno = 817 (0x331), region = 68  ;;  %p411_p10 = scmp.lt.s32.totalorder (!%p369_p9), %s1375_s18, 3 }
  0x12   : > { %s968_s11 = scalar_lea.hbm (!%p369_p9), %s1491_s12, %s1375_s18 }
  0x13   : > { %s972_s16 = sshll.u32 (!%p369_p9), %s968_s11, 4  ;;  %s973_s16 = int_to_ptr.hbm [resolvable:$true] %s972_s16 }
  0x16   : > { %v507_v1 = vld [vmem:[%s1481_s2 + $0x18] sm:$0xff]  ;;  %v418_v2 = vld [vmem:[%s1480_s1] sm:$0xf]  ;;  %v1191_v3 = vmov 2   ;;  %v1192_v4 = vmov 0   ;;  %v506_v5 = vld [vmem:[%s1481_s2 + $0x10] sm:$0xff] }
  0x17   : > { %1122 = vset.pattern.permute.xlu1 %v1191_v3  ;;  %1124 = vset.pattern.permute.xlu2 %v1192_v4  ;;  %v1193_v6 = vmov 3   ;;  %v1194_v7 = vmov 1   ;;  %v505_v8 = vld [vmem:[%s1481_s2 + $0x8] sm:$0xff]  ;;  %v539_v9 = vld [vmem:[%s1482_s3 + $0x18] sm:$0xff]  ;;  %v538_v10 = vld [vmem:[%s1482_s3 + $0x10] sm:$0xff]  ;;  %s412_s19 = scalar_select %p411_p10, %s1375_s18, 3 }
  0x18   : > { %1120 = vset.pattern.permute.xlu0 %v1192_v4  ;;  %525 = vperm.xlu2 %1124, %v507_v1   ;;  %v537_v11 = vld [vmem:[%s1482_s3 + $0x8] sm:$0xff]  ;;  %v504_v12 = vld [vmem:[%s1481_s2] sm:$0xff]  ;;  %v582_v13 = vld [vmem:[%s1484_s5 + $0x10] sm:$0xff]  ;;  %vm480_vm0 = vcmask 1043456   ;;  %vm604_vm1 = vcmask 261120   ;;  %vm949_vm2 = vcmask 1040384  }
  0x19   : > { %450 = vperm.xlu1 %1122, %v418_v2   ;;  %421 = vperm.xlu0 %1120, %v418_v2   ;;  %v583_v14 = vld [vmem:[%s1484_s5 + $0x18] sm:$0xff]  ;;  %v536_v15 = vld [vmem:[%s1482_s3] sm:$0xff]  ;;  %v581_v18 = vld [vmem:[%s1484_s5 + $0x8] sm:$0xff]  ;;  %s1038_s20 = sshll.u32 %s412_s19, 2  ;;  %s1141_s19 = sshra.s32 %s973_s16, 4  ;;  %s1142_s19 = int_to_ptr.hbm [resolvable:$true] %s1141_s19 }
  0x1a   : > { %v690_v16 = vld [vmem:[%s1486_s7 + $0x18] sm:$0xff]  ;;  %v580_v17 = vld [vmem:[%s1484_s5] sm:$0xff]  ;;  %v688_v20 = vld [vmem:[%s1486_s7 + $0x8] sm:$0xff]  ;;  %s414_s27 = scalar_lea.vmem %s1495_s0, %s1038_s20  ;;  %s407_s20 = sand.u32 1, %s1181_s24  }
  0x1b   : > { %v687_v19 = vld [vmem:[%s1486_s7] sm:$0xff]  ;;  %v689_v21 = vld [vmem:[%s1486_s7 + $0x10] sm:$0xff]  ;;  %v794_v22 = vld [vmem:[%s1488_s9 + $0x8] sm:$0xff]  ;;  %s1036_s21 = sshll.u32 %s407_s20, 1  ;;  %s958_s17 = scalar_lea.sflag [#allocation4], %s407_s20 }
  0x1c   : > { %v795_v23 = vld [vmem:[%s1488_s9 + $0x10] sm:$0xff]  ;;  %v796_v24 = vld [vmem:[%s1488_s9 + $0x18] sm:$0xff]  ;;  %v896_v25 = vld [vmem:[#allocation2] sm:$0x1]  ;;  %s409_s29 = scalar_lea.vmem [#allocation3], %s1036_s21  ;;  %s1143_s18 = scalar_lea.hbm %s1142_s19, 2 }
  0x1d   : > { %v793_v26 = vld [vmem:[%s1488_s9] sm:$0xff]  ;;  %s970_s30 = sshll.u32 %s409_s29, 4  ;;  %p1144_p11 = scmp.ne.s32.totalorder %s1142_s19, %s1143_s18  ;;  %s971_s30 = int_to_ptr.vmem [resolvable:$true] %s970_s30 }
  0x1e   : > { %v417_v27 = vld [vmem:[%s414_s27] sm:$0xff]  ;;  %s1147_s27 = scalar_lea.hbm %s1491_s12, 4  ;;  %p1148_p0 = scmp.lt.s32.totalorder %s1142_s19, %s1491_s12 }
  0x1f   : > { %v425_v30 = vperm.slane %v417_v27, 0  ;;  %v426_v31 = vperm.slane %v417_v27, 4  ;;  %v439_v32 = vperm.slane %v417_v27, 1  ;;  %v440_v33 = vperm.slane %v417_v27, 5  ;;  %p1145_p12 = pnand %p1144_p11, %p1300_p5  ;;  %p1149_p1 = scmp.lt.s32.totalorder %s1147_s27, %s1143_s18 }
  0x20   : > { %520 = vperm.xlu2 %1124, %v506_v5   ;;  %v453_v34 = vperm.slane %v417_v27, 2  ;;  %v454_v35 = vperm.slane %v417_v27, 6  ;;  %v468_v36 = vperm.slane %v417_v27, 7  ;;  %v467_v37 = vperm.slane %v417_v27, 3 }
  0x21   : > { %1123 = vset.pattern.permute.xlu1 %v1193_v6  ;;  %1121 = vset.pattern.permute.xlu0 %v1194_v7  ;;  %v429_v38 = vperm.slane %v425_v30, 0  ;;  %v430_v39 = vperm.slane %v426_v31, 0  ;;  %v443_v40 = vperm.slane %v439_v32, 1  ;;  %v444_v41 = vperm.slane %v440_v33, 1  ;;  %p1146_p13 = pneg %p1145_p12  ;;  %p1150_p2 = por %p1149_p1, %p1148_p0 }
  0x22   : > { %464 = vperm.xlu1 %1123, %v418_v2   ;;  %436 = vperm.xlu0 %1121, %v418_v2   ;;  %v457_v42 = vperm.slane %v453_v34, 2  ;;  %v458_v43 = vperm.slane %v454_v35, 2  ;;  %v472_v44 = vperm.slane %v468_v36, 3  ;;  %v471_v46 = vperm.slane %v467_v37, 3 }
  0x23   : > { %p1151_p3 = pnand %p1150_p2, %p1146_p13 }
  0x28   : > { %515 = vperm.xlu2 %1124, %v505_v8  }
  0x2a   : > { %1125 = vset.pattern.permute.xlu1 %v1192_v4  ;;  %1126 = vset.pattern.permute.xlu0 %v1192_v4 }
  0x2b   : > { %557 = vperm.xlu1 %1125, %v539_v9   ;;  %552 = vperm.xlu0 %1126, %v538_v10  }
  0x30   : > { %547 = vperm.xlu2 %1124, %v537_v11  }
  0x33   : > { %510 = vperm.xlu1 %1125, %v504_v12   ;;  %596 = vperm.xlu0 %1126, %v582_v13  }
  0x38   : > { %601 = vperm.xlu2 %1124, %v583_v14  }
  0x3b   : > { %542 = vperm.xlu1 %1125, %v536_v15   ;;  %708 = vperm.xlu0 %1126, %v690_v16  }
  0x40   : > { %586 = vperm.xlu2 %1124, %v580_v17  }
  0x43   : > { %591 = vperm.xlu1 %1125, %v581_v18   ;;  %693 = vperm.xlu0 %1126, %v687_v19  }
  0x48   : > { %698 = vperm.xlu2 %1124, %v688_v20  }
  0x4b   : > { %703 = vperm.xlu1 %1125, %v689_v21   ;;  %804 = vperm.xlu0 %1126, %v794_v22  }
  0x50   : > { %809 = vperm.xlu2 %1124, %v795_v23  }
  0x53   : > { %814 = vperm.xlu1 %1125, %v796_v24  }
  0x58   : > { %899 = vperm.xlu2 %1124, %v896_v25  }
  0x5b   : > { %799 = vperm.xlu1 %1125, %v793_v26  }
  0x72   : > { %v526_v61 = vpop.permute.xlu2 %525 }
  0x7a   : > { %v521_v2 = vpop.permute.xlu2 %520 }
  0x82   : > { %v516_v14 = vpop.permute.xlu2 %515 }
  0x8a   : > { %v548_v33 = vpop.permute.xlu2 %547 }
  0x8b   : > { %v422_v28 = vpop.permute.xlu0 %421  ;;  %v451_v29 = vpop.permute.xlu1 %450 }
  0x8c   : > { %v431_v47 = vmul.f32 %v429_v38, %v422_v28  ;;  %v432_v48 = vmul.f32 %v430_v39, %v422_v28  ;;  %v459_v51 = vmul.f32 %v457_v42, %v451_v29  ;;  %v460_v53 = vmul.f32 %v458_v43, %v451_v29 }
  0x94   : > { %v437_v45 = vpop.permute.xlu0 %436  ;;  %v465_v52 = vpop.permute.xlu1 %464 }
  0x95   : > { %v445_v49 = vmul.f32 %v443_v40, %v437_v45  ;;  %v446_v50 = vmul.f32 %v444_v41, %v437_v45  ;;  %v474_v56 = vmul.f32 %v472_v44, %v465_v52  ;;  %v473_v59 = vmul.f32 %v471_v46, %v465_v52  ;;  %v578_v52 = vld [vmem:[%s1483_s4 + $0x10] sm:$0xff] }
  0x97   : > { %v447_v54 = vadd.f32 %v445_v49, %v431_v47  ;;  %v448_v55 = vadd.f32 %v446_v50, %v432_v48  ;;  %v576_v49 = vld [vmem:[%s1483_s4] sm:$0xff]  ;;  %v579_v50 = vld [vmem:[%s1483_s4 + $0x18] sm:$0xff] }
  0x99   : > { %v461_v57 = vadd.f32 %v459_v51, %v447_v54  ;;  %v462_v58 = vadd.f32 %v460_v53, %v448_v55  ;;  %v577_v51 = vld [vmem:[%s1483_s4 + $0x8] sm:$0xff]  ;;  %v602_v55 = vpop.permute.xlu2 %601 }
  0x9b   : > { %v476_v60 = vadd.f32 %v474_v56, %v462_v58  ;;  %v475_v62 = vadd.f32 %v473_v59, %v461_v57 }
  0x9d   : > { %v479_v63 = vrot.slane %v476_v60, 4  ;;  %v558_v3 = vpop.permute.xlu1 %557  ;;  %v553_v26 = vpop.permute.xlu0 %552 }
  0x9f   : > { %v481_v0 = vsel %vm480_vm0, %v475_v62, %v479_v63 }
  0xa0   : > { %v483_v1 = vmul.f32 %v481_v0, %v417_v27 }
  0xa2   : > { %485 = vst [vmem:[#allocation1] ss:$2 sm:$0xff] %v483_v1 }
  0xa5   : > { %v511_v17 = vpop.permute.xlu1 %510  ;;  %v597_v0 = vpop.permute.xlu0 %596 }
  0xa9   : > { %v486_v4 = vld.sshfl [vmem:[#allocation1] sm:$0xff pattern:$0x75316420]  ;;  %v487_v5 = vld.sshfl [vmem:[#allocation1 + $0x8] sm:$0xff pattern:$0x75316420] }
  0xaa   : > { %v490_v6 = vsel %vm480_vm0, %v486_v4, 0.0  ;;  %v497_v7 = vsel %vm480_vm0, %v487_v5, 0.0 }
  0xab   : > { %v491_v8 = vrot.slane %v490_v6, 4  ;;  %v498_v9 = vrot.slane %v497_v7, 4 }
  0xad   : > { %v492_v10 = vadd.f32 %v491_v8, %v490_v6  ;;  %v499_v11 = vadd.f32 %v498_v9, %v497_v7  ;;  %v543_v39 = vpop.permute.xlu1 %542  ;;  %v587_v6 = vpop.permute.xlu2 %586 }
  0xaf   : > { %v493_v12 = vrot.slane %v492_v10, 2  ;;  %v500_v13 = vrot.slane %v499_v11, 2 }
  0xb1   : > { %v494_v15 = vadd.f32 %v493_v12, %v492_v10  ;;  %v501_v16 = vadd.f32 %v500_v13, %v499_v11 }
  0xb3   : > { %v495_v18 = vrot.slane %v494_v15, 1  ;;  %v502_v19 = vrot.slane %v501_v16, 1 }
  0xb5   : > { %v496_v20 = vadd.f32 %v495_v18, %v494_v15  ;;  %v503_v21 = vadd.f32 %v502_v19, %v501_v16  ;;  %v592_v1 = vpop.permute.xlu1 %591  ;;  %v683_v16 = vld [vmem:[%s1485_s6] sm:$0xff]  ;;  %v684_v18 = vld [vmem:[%s1485_s6 + $0x8] sm:$0xff]  ;;  %v685_v19 = vld [vmem:[%s1485_s6 + $0x10] sm:$0xff] }
  0xb7   : > { %v534_v22 = vmul.f32 %v526_v61, %v496_v20  ;;  %v535_v23 = vmul.f32 %v526_v61, %v503_v21  ;;  %v532_v24 = vmul.f32 %v521_v2, %v496_v20  ;;  %v533_v25 = vmul.f32 %v521_v2, %v503_v21 }
  0xb8   : > { %v530_v27 = vmul.f32 %v516_v14, %v496_v20  ;;  %v531_v28 = vmul.f32 %v516_v14, %v503_v21  ;;  %v528_v32 = vmul.f32 %v511_v17, %v496_v20  ;;  %v529_v35 = vmul.f32 %v511_v17, %v503_v21  ;;  %v686_v20 = vld [vmem:[%s1485_s6 + $0x18] sm:$0xff] }
  0xb9   : > { %v566_v29 = vadd.f32 %v558_v3, %v534_v22  ;;  %v567_v30 = vadd.f32 %v558_v3, %v535_v23  ;;  %v564_v31 = vadd.f32 %v553_v26, %v532_v24  ;;  %v565_v34 = vadd.f32 %v553_v26, %v533_v25 }
  0xba   : > { %v562_v38 = vadd.f32 %v548_v33, %v530_v27  ;;  %v563_v40 = vadd.f32 %v548_v33, %v531_v28  ;;  %v560_v41 = vadd.f32 %v543_v39, %v528_v32  ;;  %v561_v43 = vadd.f32 %v543_v39, %v529_v35  ;;  %v709_v27 = vpop.permute.xlu0 %708  ;;  %v699_v33 = vpop.permute.xlu2 %698 }
  0xbb   : > { %v574_v36 = vmax.f32 %v566_v29, 0.0  ;;  %v575_v37 = vmax.f32 %v567_v30, 0.0  ;;  %v572_v42 = vmax.f32 %v564_v31, 0.0  ;;  %v573_v44 = vmax.f32 %v565_v34, 0.0 }
  0xbc   : > { %v570_v45 = vmax.f32 %v562_v38, 0.0  ;;  %v571_v46 = vmax.f32 %v563_v40, 0.0  ;;  %v568_v47 = vmax.f32 %v560_v41, 0.0  ;;  %v569_v48 = vmax.f32 %v561_v43, 0.0 }
  0xbd   : > { %629 = vmatpush.msra.mxu0 %v574_v36  ;;  %1069 = vmatpush.msra.mxu2 %v574_v36  ;;  %v704_v28 = vpop.permute.xlu1 %703 }
  0xbe   : > { %658 = vmatpush.msra.mxu1 %v575_v37  ;;  %1073 = vmatpush.msra.mxu3 %v575_v37 }
  0xbf   : > { %630 = vmatpush.msra.mxu0 %v572_v42  ;;  %1070 = vmatpush.msra.mxu2 %v572_v42 }
  0xc0   : > { %659 = vmatpush.msra.mxu1 %v573_v44  ;;  %1074 = vmatpush.msra.mxu3 %v573_v44 }
  0xc1   : > { %631 = vmatpush.msra.mxu0 %v570_v45  ;;  %1071 = vmatpush.msra.mxu2 %v570_v45 }
  0xc2   : > { %660 = vmatpush.msra.mxu1 %v571_v46  ;;  %1075 = vmatpush.msra.mxu3 %v571_v46  ;;  %v694_v38 = vpop.permute.xlu0 %693 }
  0xc3   : > { %632 = vmatpush.msra.mxu0 %v568_v47  ;;  %1072 = vmatpush.msra.mxu2 %v568_v47 }
  0xc4   : > { %661 = vmatpush.msra.mxu1 %v569_v48  ;;  %1076 = vmatpush.msra.mxu3 %v569_v48  ;;  %v789_v48 = vld [vmem:[%s1487_s8] sm:$0xff] }
  0xc5   : > { %1039 = vmatmul.msk.f32.vlgmr.msra.gmra.mxu0 %vm604_vm1, %v576_v49  ;;  %1042 = vmatmul.msk.f32.vlgmr.msra.gmra.mxu2 %vm604_vm1, %v579_v50 }
  0xc6   : > { %1043 = vmatmul.msk.f32.vlgmr.msra.gmra.mxu1 %vm604_vm1, %v576_v49  ;;  %1046 = vmatmul.msk.f32.vlgmr.msra.gmra.mxu3 %vm604_vm1, %v579_v50  ;;  %v790_v50 = vld [vmem:[%s1487_s8 + $0x8] sm:$0xff] }
  0xcd   : > { %1040 = vmatmul.msk.f32.gmra.mxu0 %vm604_vm1, %v577_v51 }
  0xce   : > { %1044 = vmatmul.msk.f32.gmra.mxu1 %vm604_vm1, %v577_v51  ;;  %v791_v51 = vld [vmem:[%s1487_s8 + $0x10] sm:$0xff] }
  0xd5   : > { %1041 = vmatmul.msk.f32.gmra.mxu0 %vm604_vm1, %v578_v52 }
  0xd6   : > { %1045 = vmatmul.msk.f32.gmra.mxu1 %vm604_vm1, %v578_v52  ;;  %v792_v52 = vld [vmem:[%s1487_s8 + $0x18] sm:$0xff] }
 0x142   : > { %v634_v53 = vpop.f32.mrf.mxu0 }
 0x143   : > { %v663_v54 = vpop.f32.mrf.mxu1  ;;  %v635_v9 = vadd.f32 %v634_v53, %v587_v6 }
 0x144   : > { %v664_v11 = vadd.f32 %v663_v54, %v587_v6 }
 0x145   : > { %v675_v15 = vmax.f32 %v635_v9, 0.0 }
 0x146   : > { %v676_v17 = vmax.f32 %v664_v11, 0.0 }
 0x148   : > { %v643_v56 = vpop.f32.mrf.mxu2 }
 0x149   : > { %v644_v57 = vadd.f32 %v643_v56, %v602_v55  ;;  %v672_v58 = vpop.f32.mrf.mxu3 }
 0x14a   : > { %v673_v59 = vadd.f32 %v672_v58, %v602_v55  ;;  %v637_v60 = vpop.f32.mrf.mxu0 }
 0x14b   : > { %v681_v61 = vmax.f32 %v644_v57, 0.0  ;;  %v666_v62 = vpop.f32.mrf.mxu1  ;;  %v638_v3 = vadd.f32 %v637_v60, %v592_v1  ;;  %v810_v60 = vpop.permute.xlu2 %809 }
 0x14c   : > { %v682_v63 = vmax.f32 %v673_v59, 0.0  ;;  %v667_v7 = vadd.f32 %v666_v62, %v592_v1  ;;  %v815_v59 = vpop.permute.xlu1 %814  ;;  %v805_v1 = vpop.permute.xlu0 %804 }
 0x14d   : > { %735 = vmatpush.msrb.mxu2 %v681_v61  ;;  %v677_v13 = vmax.f32 %v638_v3, 0.0 }
 0x14e   : > { %764 = vmatpush.msrb.mxu3 %v682_v63  ;;  %v678_v14 = vmax.f32 %v667_v7, 0.0 }
 0x152   : > { %v640_v2 = vpop.f32.mrf.mxu0 }
 0x153   : > { %v641_v4 = vadd.f32 %v640_v2, %v597_v0  ;;  %v669_v5 = vpop.f32.mrf.mxu1 }
 0x154   : > { %v670_v8 = vadd.f32 %v669_v5, %v597_v0  ;;  %v800_v6 = vpop.permute.xlu1 %799 }
 0x155   : > { %v679_v10 = vmax.f32 %v641_v4, 0.0 }
 0x156   : > { %v680_v12 = vmax.f32 %v670_v8, 0.0 }
 0x157   : > { %736 = vmatpush.msrb.mxu2 %v679_v10 }
 0x158   : > { %765 = vmatpush.msrb.mxu3 %v680_v12 }
 0x159   : > { %737 = vmatpush.msrb.mxu2 %v677_v13 }
 0x15a   : > { %766 = vmatpush.msrb.mxu3 %v678_v14 }
 0x15b   : > { %738 = vmatpush.msrb.mxu2 %v675_v15 }
 0x15c   : > { %767 = vmatpush.msrb.mxu3 %v676_v17  ;;  %1047 = vmatmul.msk.f32.vlgmr.msrb.gmra.mxu2 %vm604_vm1, %v683_v16 }
 0x15d   : > { %1051 = vmatmul.msk.f32.vlgmr.msrb.gmra.mxu3 %vm604_vm1, %v683_v16  ;;  %v895_v16 = vld [vmem:[%s1489_s10] sm:$0x1] }
 0x164   : > { %1048 = vmatmul.msk.f32.gmra.mxu2 %vm604_vm1, %v684_v18 }
 0x165   : > { %1052 = vmatmul.msk.f32.gmra.mxu3 %vm604_vm1, %v684_v18  ;;  %v900_v18 = vpop.permute.xlu2 %899 }
 0x16c   : > { %1049 = vmatmul.msk.f32.gmra.mxu2 %vm604_vm1, %v685_v19 }
 0x16d   : > { %1053 = vmatmul.msk.f32.gmra.mxu3 %vm604_vm1, %v685_v19  ;;  %v902_v19 = vperm.slane %v900_v18, 0 }
 0x174   : > { %1050 = vmatmul.msk.f32.gmra.mxu2 %vm604_vm1, %v686_v20 }
 0x175   : > { %1054 = vmatmul.msk.f32.gmra.mxu3 %vm604_vm1, %v686_v20  ;;  %v952_v20 = vlaneseq }
 0x177   : > { %vm954_vm3 = vcmp.lt.s32.totalorder %v952_v20, 256 }
 0x1df   : > { %v740_v21 = vpop.f32.mrf.mxu2 }
 0x1e0   : > { %v769_v22 = vpop.f32.mrf.mxu3  ;;  %v741_v41 = vadd.f32 %v740_v21, %v694_v38 }
 0x1e1   : > { %v770_v43 = vadd.f32 %v769_v22, %v694_v38 }
 0x1e2   : > { %v781_v47 = vmax.f32 %v741_v41, 0.0 }
 0x1e3   : > { %v782_v49 = vmax.f32 %v770_v43, 0.0 }
 0x1e7   : > { %v743_v23 = vpop.f32.mrf.mxu2 }
 0x1e8   : > { %v772_v24 = vpop.f32.mrf.mxu3  ;;  %v744_v36 = vadd.f32 %v743_v23, %v699_v33 }
 0x1e9   : > { %v773_v39 = vadd.f32 %v772_v24, %v699_v33 }
 0x1ea   : > { %v783_v45 = vmax.f32 %v744_v36, 0.0 }
 0x1eb   : > { %v784_v46 = vmax.f32 %v773_v39, 0.0 }
 0x1ef   : > { %v746_v25 = vpop.f32.mrf.mxu2 }
 0x1f0   : > { %v775_v26 = vpop.f32.mrf.mxu3  ;;  %v747_v30 = vadd.f32 %v746_v25, %v704_v28 }
 0x1f1   : > { %v776_v34 = vadd.f32 %v775_v26, %v704_v28 }
 0x1f2   : > { %v785_v42 = vmax.f32 %v747_v30, 0.0 }
 0x1f3   : > { %v786_v44 = vmax.f32 %v776_v34, 0.0 }
 0x1f7   : > { %v749_v29 = vpop.f32.mrf.mxu2 }
 0x1f8   : > { %v750_v31 = vadd.f32 %v749_v29, %v709_v27  ;;  %v778_v32 = vpop.f32.mrf.mxu3 }
 0x1f9   : > { %v779_v35 = vadd.f32 %v778_v32, %v709_v27 }
 0x1fa   : > { %v787_v37 = vmax.f32 %v750_v31, 0.0 }
 0x1fb   : > { %v788_v40 = vmax.f32 %v779_v35, 0.0 }
 0x1fc   : > { %841 = vmatpush.msrb.mxu0 %v787_v37 }
 0x1fd   : > { %870 = vmatpush.msrb.mxu1 %v788_v40 }
 0x1fe   : > { %842 = vmatpush.msrb.mxu0 %v785_v42 }
 0x1ff   : > { %871 = vmatpush.msrb.mxu1 %v786_v44 }
 0x200   : > { %843 = vmatpush.msrb.mxu0 %v783_v45 }
 0x201   : > { %872 = vmatpush.msrb.mxu1 %v784_v46 }
 0x202   : > { %844 = vmatpush.msrb.mxu0 %v781_v47 }
 0x203   : > { %873 = vmatpush.msrb.mxu1 %v782_v49  ;;  %1055 = vmatmul.msk.f32.vlgmr.msrb.gmra.mxu0 %vm604_vm1, %v789_v48 }
 0x204   : > { %1059 = vmatmul.msk.f32.vlgmr.msrb.gmra.mxu1 %vm604_vm1, %v789_v48 }
 0x20b   : > { %1056 = vmatmul.msk.f32.gmra.mxu0 %vm604_vm1, %v790_v50 }
 0x20c   : > { %1060 = vmatmul.msk.f32.gmra.mxu1 %vm604_vm1, %v790_v50 }
 0x213   : > { %1057 = vmatmul.msk.f32.gmra.mxu0 %vm604_vm1, %v791_v51 }
 0x214   : > { %1061 = vmatmul.msk.f32.gmra.mxu1 %vm604_vm1, %v791_v51 }
 0x21b   : > { %1058 = vmatmul.msk.f32.gmra.mxu0 %vm604_vm1, %v792_v52 }
 0x21c   : > { %1062 = vmatmul.msk.f32.gmra.mxu1 %vm604_vm1, %v792_v52 }
 0x280   : > { %v846_v53 = vpop.f32.mrf.mxu0 }
 0x281   : > { %v875_v54 = vpop.f32.mrf.mxu1  ;;  %v847_v9 = vadd.f32 %v846_v53, %v800_v6 }
 0x282   : > { %v876_v11 = vadd.f32 %v875_v54, %v800_v6 }
 0x283   : > { %v887_v15 = vmax.f32 %v847_v9, 0.0 }
 0x284   : > { %v888_v17 = vmax.f32 %v876_v11, 0.0 }
 0x288   : > { %v849_v55 = vpop.f32.mrf.mxu0 }
 0x289   : > { %v878_v56 = vpop.f32.mrf.mxu1  ;;  %v850_v4 = vadd.f32 %v849_v55, %v805_v1 }
 0x28a   : > { %v879_v7 = vadd.f32 %v878_v56, %v805_v1 }
 0x28b   : > { %v889_v13 = vmax.f32 %v850_v4, 0.0 }
 0x28c   : > { %v890_v14 = vmax.f32 %v879_v7, 0.0 }
 0x290   : > { %v852_v57 = vpop.f32.mrf.mxu0 }
 0x291   : > { %v881_v58 = vpop.f32.mrf.mxu1  ;;  %v853_v62 = vadd.f32 %v852_v57, %v810_v60 }
 0x292   : > { %v882_v2 = vadd.f32 %v881_v58, %v810_v60 }
 0x293   : > { %v891_v10 = vmax.f32 %v853_v62, 0.0 }
 0x294   : > { %v892_v12 = vmax.f32 %v882_v2, 0.0 }
 0x298   : > { %v855_v61 = vpop.f32.mrf.mxu0 }
 0x299   : > { %v856_v63 = vadd.f32 %v855_v61, %v815_v59  ;;  %v884_v0 = vpop.f32.mrf.mxu1 }
 0x29a   : > { %v885_v3 = vadd.f32 %v884_v0, %v815_v59 }
 0x29b   : > { %v893_v5 = vmax.f32 %v856_v63, 0.0 }
 0x29c   : > { %v894_v8 = vmax.f32 %v885_v3, 0.0 }
 0x29d   : > { %918 = vmatpush.msra.mxu2 %v893_v5 }
 0x29e   : > { %938 = vmatpush.msra.mxu3 %v894_v8 }
 0x29f   : > { %919 = vmatpush.msra.mxu2 %v891_v10 }
 0x2a0   : > { %939 = vmatpush.msra.mxu3 %v892_v12 }
 0x2a1   : > { %920 = vmatpush.msra.mxu2 %v889_v13 }
 0x2a2   : > { %940 = vmatpush.msra.mxu3 %v890_v14 }
 0x2a3   : > { %921 = vmatpush.msra.mxu2 %v887_v15 }
 0x2a4   : > { %941 = vmatpush.msra.mxu3 %v888_v17  ;;  %1063 = vmatmul.msk.f32.vlgmr.msra.gmra.mxu2 %vm604_vm1, %v895_v16 }
 0x2a5   : > { %1064 = vmatmul.msk.f32.vlgmr.msra.gmra.mxu3 %vm604_vm1, %v895_v16 }
 0x327   : > { %v923_v21 = vpop.f32.mrf.mxu2 }
 0x328   : > { %v943_v22 = vpop.f32.mrf.mxu3  ;;  %v924_v24 = vadd.f32 %v923_v21, %v902_v19 }
 0x329   : > { %v944_v23 = vadd.f32 %v943_v22, %v902_v19 }
 0x32b   : > { %v948_v25 = vrot.slane %v944_v23, 7 }
 0x32d   : > { %v950_v26 = vsel %vm949_vm2, %v924_v24, %v948_v25 }
 0x32e   : > { %956 = vst.msk [vmem:[%s409_s29] sm:$0x3] %vm954_vm3, %v950_v26 }
 0x32f   : > { %1154 = shalt.err (!%p1151_p3)
}
 0x330   : > { %1077 = dma.vmem_to_hbm [thread:$0]  (%p1300_p5), %s971_s30, 32, %s973_s16, %s958_s17  }
 0x331 PF: > { %p1083_p4 = scmp.ge.s32.totalorder %s1189_s26, 2  ;;  %s984_s20 = sand.u32 1, %s1177_s23  }
 0x332   : > { %s985_s29 = scalar_lea.sflag [#allocation4], %s984_s20 }
 0x333   : > { %p1080_p7 = pnand %p1083_p4, %p1304_p6 }
 0x335   : > { %p1081_p8 = pneg %p1080_p7 }
 0x337   : > { %1172 = dma.done.wait (%p1081_p8), %s985_s29, 32  }
 0x338   : > { %1174 = vsyncadd (%p1081_p8), %s985_s29, 4294967264  ;;  %p24_p9 = scmp.ge.s32.totalorder %s1286_s28, 4   ;;  %s1496_s23 = smov %s1181_s24 }
 0x339   : > { %s1497_s24 = smov %s1185_s25  ;;  %s1498_s25 = smov %s1298_s13 }
 0x33a   : > { %s1499_s26 = smov %s1286_s28  ;;  %26 = sbr.rel (!%p24_p9) target bundleno = 6 (0x6), region = 103 }
 0x33f   :  { %991 = vsyncpa [#allocation4], 1 }
 0x340   :  { %993 = vsyncpa [#allocation4 + $0x1], 1 }

</bundles_post_ra>
